<compile_context>
chip_gen: v6e
topology: v6e:2x2x1
jax: 0.10.0
libtpu: 0.0.40
codegen_flags: <defaults>
</compile_context>

<pallas_src>
import functools

import jax
import jax.numpy as jnp
from jax.experimental import pallas as pl
from jax.experimental.pallas import tpu as pltpu

LANE = 128
MAX_BLOCK_ROWS = 2048  # 1 MiB per f32 input block -> ~4 MiB double-buffered,
                       # safe under the scoped-VMEM defaults on v5e/v6e/v7x.
TH = 0.9
EPS = 1e-8

_SUBLANE_MULT = {4: 8, 2: 16, 1: 32}  # min sublane multiple by itemsize


def _irmape_kernel(thr_ref, pred_ref, targ_ref, sum_ref, cnt_ref, *,
                   eps, block_rows, blocks_per_core, n_rows):
    """Accumulates sum(|t - p| / (|t| + eps)) and count over masked elements.

    Mask = (row in bounds) & (target != 0) & (target >= threshold).
    Threshold arrives via scalar prefetch (SMEM). Outputs are per-core
    (8, 128) f32 accumulators resident in VMEM across the reduction axis.
    """
    c = pl.program_id(0)   # core / parallel axis
    i = pl.program_id(1)   # reduction ("arbitrary") axis

    @pl.when(i == 0)
    def _():
        sum_ref[...] = jnp.zeros_like(sum_ref)
        cnt_ref[...] = jnp.zeros_like(cnt_ref)

    t = targ_ref[...].astype(jnp.float32)
    p = pred_ref[...].astype(jnp.float32)
    thr = thr_ref[0]

    # Row-validity mask: handles the partial trailing block (and any phantom
    # block introduced by splitting an odd block count across two cores).
    row0 = (c * blocks_per_core + i) * block_rows
    rows = jax.lax.broadcasted_iota(jnp.int32, (block_rows, LANE), 0) + row0
    valid = rows < n_rows

    mask = valid & (t != 0.0) & (t >= thr)
    ape = jnp.where(mask, jnp.abs((t - p) / (jnp.abs(t) + eps)), 0.0)
    cntv = jnp.where(mask, 1.0, 0.0)

    # Fold the block to a vreg-shaped (8, LANE) partial with sublane-aligned
    # VPU adds only; no per-step cross-lane reduction, no scalar RMW chain.
    sum_ref[...] += jnp.sum(ape.reshape(block_rows // 8, 8, LANE), axis=0)
    cnt_ref[...] += jnp.sum(cntv.reshape(block_rows // 8, 8, LANE), axis=0)


def irmape_pallas(pred, target, th=TH, eps=EPS):
    dtype = jnp.promote_types(pred.dtype, target.dtype)
    if not jnp.issubdtype(dtype, jnp.floating):
        dtype = jnp.float32
    p = pred.reshape(-1)
    t = target.reshape(-1)
    if p.dtype != dtype:
        p = p.astype(dtype)
    if t.dtype != dtype:
        t = t.astype(dtype)
    total = p.shape[0]

    # ---- quantile threshold over the non-zero targets (JAX glue, f32) ----
    t32 = t.astype(jnp.float32)
    nz = t32 != 0.0
    n_nz = jnp.sum(nz)
    sorted_vals = jnp.sort(jnp.where(nz, t32, jnp.inf))  # valid values first
    # torch.quantile linear interpolation: index = q * (n - 1)
    idx = th * (jnp.maximum(n_nz.astype(jnp.float32), 1.0) - 1.0)
    lo = jnp.floor(idx).astype(jnp.int32)
    hi = jnp.ceil(idx).astype(jnp.int32)
    frac = idx - lo.astype(jnp.float32)
    thr = sorted_vals[lo] * (1.0 - frac) + sorted_vals[hi] * frac
    thr = thr.reshape(1).astype(jnp.float32)

    # ---- lane-dense (rows, 128) view; pad only if statically required ----
    row_mult = _SUBLANE_MULT.get(jnp.dtype(dtype).itemsize, 8)
    tile_elems = row_mult * LANE
    pad = (-total) % tile_elems  # static Python int
    if pad:
        # TODO(synk): this copies both arrays; it only triggers when the flat
        # size is not a multiple of row_mult*128 (padding has target == 0 and
        # is excluded by the mask, so it never contaminates the reduction).
        p = jnp.pad(p, (0, pad))
        t = jnp.pad(t, (0, pad))
    n_rows = (total + pad) // LANE
    p2 = p.reshape(n_rows, LANE)
    t2 = t.reshape(n_rows, LANE)

    block_rows = min(MAX_BLOCK_ROWS, n_rows)
    num_blocks = (n_rows + block_rows - 1) // block_rows
    num_cores = 2 if num_blocks >= 2 else 1          # v7x dual-TC; no-op on 1-TC
    bpc = (num_blocks + num_cores - 1) // num_cores  # blocks per core
    need_clamp = (num_cores * bpc != num_blocks)

    def in_map(c, i, thr_ref):
        blk = c * bpc + i
        if need_clamp:
            # Phantom tail block on the second core: clamp the DMA source and
            # rely on the in-kernel row mask to zero its contribution.
            blk = jnp.minimum(blk, num_blocks - 1)
        return (blk, 0)

    kernel = functools.partial(
        _irmape_kernel, eps=eps, block_rows=block_rows,
        blocks_per_core=bpc, n_rows=n_rows)

    sum_out, cnt_out = pl.pallas_call(
        kernel,
        out_shape=(
            jax.ShapeDtypeStruct((num_cores * 8, LANE), jnp.float32),
            jax.ShapeDtypeStruct((num_cores * 8, LANE), jnp.float32),
        ),
        grid_spec=pltpu.PrefetchScalarGridSpec(
            num_scalar_prefetch=1,
            grid=(num_cores, bpc),
            in_specs=[
                pl.BlockSpec((block_rows, LANE), in_map),
                pl.BlockSpec((block_rows, LANE), in_map),
            ],
            out_specs=[
                pl.BlockSpec((8, LANE), lambda c, i, thr_ref: (c, 0)),
                pl.BlockSpec((8, LANE), lambda c, i, thr_ref: (c, 0)),
            ],
        ),
        compiler_params=pltpu.CompilerParams(
            dimension_semantics=("parallel", "arbitrary"),
        ),
    )(thr, p2, t2)

    ape_sum = jnp.sum(sum_out)
    cnt = jnp.sum(cnt_out)
    result = jnp.where(cnt > 0.0, ape_sum / jnp.maximum(cnt, 1.0), 0.0)
    # if there are no non-zero targets at all, the loss is 0
    result = jnp.where(n_nz > 0, result, 0.0)
    return result


def irmape_ref(pred, target, th=TH, eps=EPS):
    """Pure-JAX reference with identical semantics (for verification)."""
    p = pred.reshape(-1).astype(jnp.float32)
    t = target.reshape(-1).astype(jnp.float32)
    nz = t != 0.0
    n_nz = jnp.sum(nz)
    sorted_vals = jnp.sort(jnp.where(nz, t, jnp.inf))
    idx = th * (jnp.maximum(n_nz.astype(jnp.float32), 1.0) - 1.0)
    lo = jnp.floor(idx).astype(jnp.int32)
    hi = jnp.ceil(idx).astype(jnp.int32)
    frac = idx - lo.astype(jnp.float32)
    thr = sorted_vals[lo] * (1.0 - frac) + sorted_vals[hi] * frac
    mask = (t >= thr) & nz
    cnt = jnp.sum(mask.astype(jnp.float32))
    ape = jnp.where(mask, jnp.abs((t - p) / (jnp.abs(t) + eps)), 0.0)
    res = jnp.where(cnt > 0.0, jnp.sum(ape) / jnp.maximum(cnt, 1.0), 0.0)
    return jnp.where(n_nz > 0, res, 0.0)


if __name__ == "__main__":
    key = jax.random.PRNGKey(0)
    k_pred, k_targ, k_zero = jax.random.split(key, 3)

    shape = (2, 4, 16, 16)  # NCHW
    pred = jax.random.normal(k_pred, shape, dtype=jnp.float32)
    target = jax.random.normal(k_targ, shape, dtype=jnp.float32) * 3.0
    # sprinkle exact zeros so the non-zero mask is exercised
    zero_mask = jax.random.uniform(k_zero, shape) < 0.3
    target = jnp.where(zero_mask, 0.0, target)

    out = irmape_pallas(pred, target)
    out = jax.block_until_ready(out)

    ref = jax.block_until_ready(irmape_ref(pred, target))
    assert jnp.allclose(out, ref, rtol=1e-5, atol=1e-6), (out, ref)

    print("KERNEL_OK")
</pallas_src>

<mosaic_0001>
module attributes {stable_mosaic.version = 11 : i64} {
  func.func @_irmape_kernel(%arg0: i32, %arg1: i32, %arg2: memref<1xf32, #tpu.memory_space<smem>>, %arg3: memref<16x128xf32, #tpu.memory_space<vmem>>, %arg4: memref<16x128xf32, #tpu.memory_space<vmem>>, %arg5: memref<8x128xf32, #tpu.memory_space<vmem>>, %arg6: memref<8x128xf32, #tpu.memory_space<vmem>>) attributes {dimension_semantics = [#tpu.dimension_semantics<parallel>, #tpu.dimension_semantics<arbitrary>], iteration_bounds = array<i64: 1, 1>, scalar_prefetch = 1 : i64, scratch_operands = 0 : i64, tpu.core_type = #tpu.core_type<tc>, window_params = [{transform_indices = @transform_0, window_bounds = array<i64: 16, 128>}, {transform_indices = @transform_1, window_bounds = array<i64: 16, 128>}, {transform_indices = @transform_2, window_bounds = array<i64: 8, 128>}, {transform_indices = @transform_3, window_bounds = array<i64: 8, 128>}]} {
    %c0_i32 = arith.constant 0 : i32
    %0 = arith.cmpi eq, %arg1, %c0_i32 : i32
    %1 = arith.extui %0 : i1 to i32
    %c0_i32_0 = arith.constant 0 : i32
    %2 = arith.cmpi ne, %1, %c0_i32_0 : i32
    scf.if %2 {
      %cst_20 = arith.constant 0.000000e+00 : f32
      %41 = vector.broadcast %cst_20 : f32 to vector<8x128xf32>
      %c0_21 = arith.constant 0 : index
      %c0_22 = arith.constant 0 : index
      %42 = vector.load %arg5[%c0_21, %c0_22] : memref<8x128xf32, #tpu.memory_space<vmem>>, vector<8x128xf32>
      tpu.vector_store %arg5[%c0_21, %c0_22], %41 {strides = array<i32>} : memref<8x128xf32, #tpu.memory_space<vmem>>, vector<8x128xf32>,
      %cst_23 = arith.constant 0.000000e+00 : f32
      %43 = vector.broadcast %cst_23 : f32 to vector<8x128xf32>
      %c0_24 = arith.constant 0 : index
      %c0_25 = arith.constant 0 : index
      %44 = vector.load %arg6[%c0_24, %c0_25] : memref<8x128xf32, #tpu.memory_space<vmem>>, vector<8x128xf32>
      tpu.vector_store %arg6[%c0_24, %c0_25], %43 {strides = array<i32>} : memref<8x128xf32, #tpu.memory_space<vmem>>, vector<8x128xf32>,
    } else {
    }
    %c0 = arith.constant 0 : index
    %c0_1 = arith.constant 0 : index
    %3 = vector.load %arg4[%c0, %c0_1] : memref<16x128xf32, #tpu.memory_space<vmem>>, vector<16x128xf32>
    %c0_2 = arith.constant 0 : index
    %c0_3 = arith.constant 0 : index
    %4 = vector.load %arg3[%c0_2, %c0_3] : memref<16x128xf32, #tpu.memory_space<vmem>>, vector<16x128xf32>
    %c0_4 = arith.constant 0 : index
    %5 = memref.load %arg2[%c0_4] : memref<1xf32, #tpu.memory_space<smem>>
    %c1_i32 = arith.constant 1 : i32
    %6 = arith.muli %arg0, %c1_i32 : i32
    %7 = arith.addi %6, %arg1 : i32
    %c16_i32 = arith.constant 16 : i32
    %8 = arith.muli %7, %c16_i32 : i32
    %9 = tpu.iota {dimensions = array<i32: 0>} : vector<16x128xi32>
    %10 = vector.broadcast %8 : i32 to vector<16x128xi32>
    %11 = arith.addi %9, %10 : vector<16x128xi32>
    %c16_i32_5 = arith.constant 16 : i32
    %12 = vector.broadcast %c16_i32_5 : i32 to vector<16x128xi32>
    %13 = arith.cmpi slt, %11, %12 : vector<16x128xi32>
    %cst = arith.constant 0.000000e+00 : f32
    %14 = vector.broadcast %cst : f32 to vector<16x128xf32>
    %15 = arith.cmpf one, %3, %14 : vector<16x128xf32>
    %16 = arith.andi %13, %15 : vector<16x128xi1>
    %17 = vector.broadcast %5 : f32 to vector<16x128xf32>
    %18 = arith.cmpf oge, %3, %17 : vector<16x128xf32>
    %19 = arith.andi %16, %18 : vector<16x128xi1>
    %20 = arith.subf %3, %4 : vector<16x128xf32>
    %21 = math.absf %3 : vector<16x128xf32>
    %cst_6 = arith.constant 9.99999993E-9 : f32
    %22 = vector.broadcast %cst_6 : f32 to vector<16x128xf32>
    %23 = arith.addf %21, %22 : vector<16x128xf32>
    %24 = arith.divf %20, %23 : vector<16x128xf32>
    %25 = math.absf %24 : vector<16x128xf32>
    %cst_7 = arith.constant 0.000000e+00 : f32
    %26 = vector.broadcast %cst_7 : f32 to vector<16x128xf32>
    %27 = arith.select %19, %25, %26 : vector<16x128xi1>, vector<16x128xf32>
    %cst_8 = arith.constant 1.000000e+00 : f32
    %cst_9 = arith.constant 0.000000e+00 : f32
    %28 = vector.broadcast %cst_8 : f32 to vector<16x128xf32>
    %29 = vector.broadcast %cst_9 : f32 to vector<16x128xf32>
    %30 = arith.select %19, %28, %29 : vector<16x128xi1>, vector<16x128xf32>
    %c0_10 = arith.constant 0 : index
    %c0_11 = arith.constant 0 : index
    %31 = vector.load %arg5[%c0_10, %c0_11] : memref<8x128xf32, #tpu.memory_space<vmem>>, vector<8x128xf32>
    %32 = vector.shape_cast %27 : vector<16x128xf32> to vector<2x8x128xf32>
    %cst_12 = arith.constant dense<0.000000e+00> : vector<8x128xf32>
    %33 = vector.multi_reduction <add>, %32, %cst_12 [0] : vector<2x8x128xf32> to vector<8x128xf32>
    %34 = arith.addf %31, %33 : vector<8x128xf32>
    %c0_13 = arith.constant 0 : index
    %c0_14 = arith.constant 0 : index
    %35 = vector.load %arg5[%c0_13, %c0_14] : memref<8x128xf32, #tpu.memory_space<vmem>>, vector<8x128xf32>
    tpu.vector_store %arg5[%c0_13, %c0_14], %34 {strides = array<i32>} : memref<8x128xf32, #tpu.memory_space<vmem>>, vector<8x128xf32>,
    %c0_15 = arith.constant 0 : index
    %c0_16 = arith.constant 0 : index
    %36 = vector.load %arg6[%c0_15, %c0_16] : memref<8x128xf32, #tpu.memory_space<vmem>>, vector<8x128xf32>
    %37 = vector.shape_cast %30 : vector<16x128xf32> to vector<2x8x128xf32>
    %cst_17 = arith.constant dense<0.000000e+00> : vector<8x128xf32>
    %38 = vector.multi_reduction <add>, %37, %cst_17 [0] : vector<2x8x128xf32> to vector<8x128xf32>
    %39 = arith.addf %36, %38 : vector<8x128xf32>
    %c0_18 = arith.constant 0 : index
    %c0_19 = arith.constant 0 : index
    %40 = vector.load %arg6[%c0_18, %c0_19] : memref<8x128xf32, #tpu.memory_space<vmem>>, vector<8x128xf32>
    tpu.vector_store %arg6[%c0_18, %c0_19], %39 {strides = array<i32>} : memref<8x128xf32, #tpu.memory_space<vmem>>, vector<8x128xf32>,
    return
  }
  func.func @transform_0(%arg0: i32, %arg1: i32, %arg2: memref<1xf32, #tpu.memory_space<smem>>) -> (i32, i32) {
    %c1_i32 = arith.constant 1 : i32
    %0 = arith.muli %arg0, %c1_i32 : i32
    %1 = arith.addi %0, %arg1 : i32
    %c0_i32 = arith.constant 0 : i32
    %c0_i32_0 = arith.constant 0 : i32
    return %1, %c0_i32 : i32, i32
  }
  func.func @transform_1(%arg0: i32, %arg1: i32, %arg2: memref<1xf32, #tpu.memory_space<smem>>) -> (i32, i32) {
    %c1_i32 = arith.constant 1 : i32
    %0 = arith.muli %arg0, %c1_i32 : i32
    %1 = arith.addi %0, %arg1 : i32
    %c0_i32 = arith.constant 0 : i32
    %c0_i32_0 = arith.constant 0 : i32
    return %1, %c0_i32 : i32, i32
  }
  func.func @transform_2(%arg0: i32, %arg1: i32, %arg2: memref<1xf32, #tpu.memory_space<smem>>) -> (i32, i32) {
    %c0_i32 = arith.constant 0 : i32
    %c0_i32_0 = arith.constant 0 : i32
    return %arg0, %c0_i32 : i32, i32
  }
  func.func @transform_3(%arg0: i32, %arg1: i32, %arg2: memref<1xf32, #tpu.memory_space<smem>>) -> (i32, i32) {
    %c0_i32 = arith.constant 0 : i32
    %c0_i32_0 = arith.constant 0 : i32
    return %arg0, %c0_i32 : i32, i32
  }
}

</mosaic_0001>

<bundles_post_ra>
// kernel: tpu_custom_call.1
= control target key start
LH: loop header
LB: loop body
LE: loop exit
PB: predicated region body
PF: predicated region fallthrough
CT: control target
= control target key end

     0   :  { %11 = vsyncpa [#allocation5], 0  ;;  %s303_s0 = inlined_call_operand.<no memory space> [shape: f32[1], index: 0, kind: input, shape index: {}]   ;;  %s304_s1 = inlined_call_operand.hbm [shape: f32[16,128], index: 1, kind: input, shape index: {}]   ;;  %s305_s2 = inlined_call_operand.hbm [shape: f32[16,128], index: 2, kind: input, shape index: {}]   ;;  %s306_s3 = inlined_call_operand.hbm [shape: f32[8,128], index: 3, kind: output, shape index: {0}]   ;;  %s307_s4 = inlined_call_operand.hbm [shape: f32[8,128], index: 4, kind: output, shape index: {1}]  }
   0x1   :  { %12 = vsyncpa [#allocation8], 0 }
   0x2   :  { %13 = vsyncpa [#allocation6], 0 }
   0x3   :  { %14 = vsyncpa [#allocation11], 0  ;;  %s240_s15 = smov [#allocation4]  }
   0x4   :  { %s24_s16 = sshll.u32 %s240_s15, 4  ;;  %s25_s16 = int_to_ptr.vmem [resolvable:$true] %s24_s16 }
   0x5   :  { %s160_s17 = scalar_lea.vmem %s25_s16, 256  ;;  %p165_p1 = scmp.lt.s32.totalorder %s25_s16, %s25_s16 }
   0x6   :  { %p161_p0 = scmp.ne.s32.totalorder %s25_s16, %s160_s17  ;;  %p166_p2 = scmp.lt.s32.totalorder %s160_s17, %s160_s17 }
   0x8   :  { %p167_p3 = por %p166_p2, %p165_p1 }
   0xa   :  { %p168_p4 = pnand %p167_p3, %p161_p0 }
   0xc   :  { %171 = shalt.err (!%p168_p4)
}
   0xd   :  { %s241_s18 = smov 128   ;;  %s242_s19 = smov 8  }
   0xe   :  { %30 = dma.hbm_to_vmem [thread:$0]  %s304_s1, 256, %s25_s16, [#allocation5], %s241_s18, %s241_s18, %s242_s19  }
   0xf   :  { %s243_s22 = smov [#allocation7]  }
  0x10   :  { %s40_s23 = sshll.u32 %s243_s22, 4  ;;  %s41_s23 = int_to_ptr.vmem [resolvable:$true] %s40_s23 }
  0x11   :  { %s180_s24 = scalar_lea.vmem %s41_s23, 256  ;;  %p185_p6 = scmp.lt.s32.totalorder %s41_s23, %s41_s23 }
  0x12   :  { %p181_p5 = scmp.ne.s32.totalorder %s41_s23, %s180_s24  ;;  %p186_p7 = scmp.lt.s32.totalorder %s180_s24, %s180_s24 }
  0x14   :  { %p187_p8 = por %p186_p7, %p185_p6 }
  0x16   :  { %p188_p9 = pnand %p187_p8, %p181_p5 }
  0x18   :  { %191 = shalt.err (!%p188_p9)
}
  0x19   :  { %46 = dma.hbm_to_vmem [thread:$0]  %s305_s2, 256, %s41_s23, [#allocation8], %s241_s18, %s241_s18, %s242_s19  }
  0x1a   :  { %232 = dma.done.wait [#allocation5], 256  }
  0x1b   :  { %233 = vsyncadd [#allocation5], 4294967040 }
  0x1c   :  { %234 = dma.done.wait [#allocation8], 256  }
  0x1d   :  { %235 = vsyncadd [#allocation8], 4294967040  ;;  %v82_v0 = vstv %s303_s0  ;;  %v63_v1 = vld [vmem:[#allocation7] sm:$0xff]  ;;  %v64_v2 = vld [vmem:[#allocation7 + $0x8] sm:$0xff]  ;;  %v244_v7 = vmov 0.0   ;;  %s245_s0 = smov [#allocation10]  }
  0x1e   :  { %vm78_vm0 = vcmp.ne.f32.partialorder %v63_v1, 0.0  ;;  %vm79_vm1 = vcmp.ne.f32.partialorder %v64_v2, 0.0  ;;  %vm83_vm2 = vcmp.ge.f32.partialorder %v63_v1, %v82_v0  ;;  %vm84_vm3 = vcmp.ge.f32.partialorder %v64_v2, %v82_v0  ;;  %s127_s2 = sshll.u32 %s245_s0, 4  ;;  %s128_s2 = int_to_ptr.vmem [resolvable:$true] %s127_s2 }
  0x1f   :  { %vm281_vm4 = vmand %vm78_vm0, %vm83_vm2  ;;  %v89_v4 = vand.u32 2147483647, %v63_v1  ;;  %v90_v5 = vand.u32 2147483647, %v64_v2  ;;  %s192_s28 = scalar_lea.vmem %s128_s2, 128  ;;  %p197_p11 = scmp.lt.s32.totalorder %s128_s2, %s128_s2 }
  0x20   :  { %vm285_vm5 = vmand %vm79_vm1, %vm84_vm3  ;;  %v101_v8 = vsel %vm281_vm4, 1.0, %v244_v7  ;;  %p193_p10 = scmp.ne.s32.totalorder %s128_s2, %s192_s28  ;;  %p198_p12 = scmp.lt.s32.totalorder %s192_s28, %s192_s28 }
  0x21   :  { %v91_v9 = vadd.f32 1e-08, %v89_v4  ;;  %v92_v10 = vadd.f32 1e-08, %v90_v5  ;;  %v102_v11 = vsel %vm285_vm5, 1.0, %v244_v7 }
  0x22   :  { %v108_v12 = vadd.f32 %v102_v11, %v101_v8  ;;  %p199_p13 = por %p198_p12, %p197_p11 }
  0x23   :  { %148 = vrcp.f32 %v91_v9 }
  0x24   :  { %150 = vrcp.f32 %v92_v10  ;;  %110 = vst [vmem:[#allocation10] sm:$0xff] %v108_v12  ;;  %p200_p0 = pnand %p199_p13, %p193_p10 }
  0x26   :  { %203 = shalt.err (!%p200_p0)
}
  0x27   :  { %130 = dma.vmem_to_hbm [thread:$0]  %s128_s2, 128, %s307_s4, [#allocation11]   ;;  %v65_v13 = vld [vmem:[#allocation4] sm:$0xff]  ;;  %v66_v14 = vld [vmem:[#allocation4 + $0x8] sm:$0xff] }
  0x28   :  { %v87_v15 = vsub.f32 %v63_v1, %v65_v13  ;;  %v88_v16 = vsub.f32 %v64_v2, %v66_v14  ;;  %s246_s5 = smov [#allocation9]  }
  0x29   :  { %s117_s6 = sshll.u32 %s246_s5, 4  ;;  %s118_s6 = int_to_ptr.vmem [resolvable:$true] %s117_s6 }
  0x2a   :  { %s212_s4 = scalar_lea.vmem %s118_s6, 128  ;;  %p217_p2 = scmp.lt.s32.totalorder %s118_s6, %s118_s6 }
  0x2b   :  { %p213_p1 = scmp.ne.s32.totalorder %s118_s6, %s212_s4  ;;  %p218_p3 = scmp.lt.s32.totalorder %s212_s4, %s212_s4 }
  0x2d   :  { %p219_p4 = por %p218_p3, %p217_p2 }
  0x2f   :  { %p220_p5 = pnand %p219_p4, %p213_p1 }
  0x30   :  { %v149_v17 = vpop.eup %148 }
  0x31   :  { %v151_v18 = vpop.eup %150  ;;  %v94_v19 = vmul.f32 %v149_v17, %v87_v15 }
  0x32   :  { %v96_v20 = vmul.f32 %v151_v18, %v88_v16 }
  0x33   :  { %v97_v21 = vand.u32 2147483647, %v94_v19 }
  0x34   :  { %v98_v22 = vand.u32 2147483647, %v96_v20 }
  0x35   :  { %v99_v23 = vsel %vm281_vm4, %v97_v21, 0.0 }
  0x36   :  { %v100_v24 = vsel %vm285_vm5, %v98_v22, 0.0 }
  0x37   :  { %v104_v25 = vadd.f32 %v100_v24, %v99_v23 }
  0x39   :  { %106 = vst [vmem:[#allocation9] sm:$0xff] %v104_v25 }
  0x3a   :  { %223 = shalt.err (!%p220_p5)
}
  0x3b   :  { %120 = dma.vmem_to_hbm [thread:$0]  %s118_s6, 128, %s306_s3, [#allocation6]  }
  0x3c   :  { %236 = dma.done.wait [#allocation6], 128  }
  0x3d   :  { %237 = vsyncadd [#allocation6], 4294967168 }
  0x3e   :  { %238 = dma.done.wait [#allocation11], 128  }
  0x3f   :  { %239 = vsyncadd [#allocation11], 4294967168 }
  0x40   :  { %137 = vsyncpa [#allocation5], 1 }
  0x41   :  { %138 = vsyncpa [#allocation8], 1 }
  0x42   :  { %139 = vsyncpa [#allocation6], 1 }
  0x43   :  { %140 = vsyncpa [#allocation11], 1 }

</bundles_post_ra>
